<compile_context>
chip_gen: v7x
topology: tpu7x:2x2x1
jax: 0.10.0
libtpu: 0.0.40
codegen_flags: <defaults>
</compile_context>

<pallas_src>
import functools

import jax
import jax.numpy as jnp
import numpy as np
from jax.experimental import pallas as pl
from jax.experimental.pallas import tpu as pltpu

LANES = 128
ACC_ROWS = 64            # resident accumulator block height (multiple of 8 & 32)
MAX_BLOCK_ROWS = 6144    # 3 MiB f32 + 0.75 MiB i8 per step (double-buffered)
NUM_PARTS = 2            # leading "parallel" grid axis (megacore sharding)
MIN_PART_ROWS = 1024     # don't split tiny problems across parts


def _round_up(x, m):
    return -(-x // m) * m


def _focal_loss_kernel(logit_ref, sign_ref, out_ref, *, gamma, w0, w1):
    i = pl.program_id(1)

    @pl.when(i == 0)
    def _():
        out_ref[...] = jnp.zeros_like(out_ref)

    x = logit_ref[...].astype(jnp.float32)
    s = sign_ref[...].astype(jnp.float32)        # +1 for target==1, -1 for target==0

    # q = p if target==1 else 1-p, folded into the sigmoid argument.
    q = jax.nn.sigmoid(x * s)
    q = jnp.clip(q, 1e-8, 1.0 - 1e-8)

    d = 1.0 - q
    if gamma == 2.0:
        focus = d * d                            # d in [0,1): clip(.,0,2) is a no-op
    elif gamma == 1.0:
        focus = d
    else:
        # d**gamma via exp/log (EUP); guard d==0 (q clamped/rounded to 1.0).
        focus = jnp.exp(gamma * jnp.log(jnp.maximum(d, 1e-20)))
        focus = jnp.clip(focus, 0.0, 2.0)

    neg_loss = focus * jnp.log(q)                # == -(per-element loss) / weight
    if w0 == w1:
        if w0 != 1.0:
            neg_loss = w0 * neg_loss
    else:
        c0, c1 = 0.5 * (w0 + w1), 0.5 * (w1 - w0)
        neg_loss = (c0 + c1 * s) * neg_loss      # == class_weight[target] * (...)

    # Fold (block_rows, 128) -> (ACC_ROWS, 128) with vector adds; accumulate into
    # the resident output block (subtract so the accumulated value is +loss).
    r = neg_loss.shape[0]
    out_ref[...] -= neg_loss.reshape(r // ACC_ROWS, ACC_ROWS, LANES).sum(axis=0)


def robust_focal_loss_2d(logit, target, class_weight=None, gamma=2.0):
    """Sigmoid robust focal loss, mean-reduced. logit/target: same #elements."""
    if class_weight is None:
        class_weight = [1.0, 1.0]
    w0, w1 = float(class_weight[0]), float(class_weight[1])

    x = jnp.ravel(logit)
    if x.dtype not in (jnp.float32, jnp.bfloat16):
        x = x.astype(jnp.float32)                # bf16 logits stream as bf16 (2 B/elem)
    # int8 sign stream in {-1, +1}: 1 B/elem of HBM traffic for the target.
    s = (2 * jnp.ravel(target).astype(jnp.int8) - 1).astype(jnp.int8)
    n = x.shape[0]

    rows_needed = pl.cdiv(n, LANES)
    num_parts = NUM_PARTS if rows_needed >= NUM_PARTS * MIN_PART_ROWS else 1
    # Spread rows evenly over num_parts * nb_per_part blocks of <= MAX_BLOCK_ROWS
    # so padding waste is bounded by ~ACC_ROWS rows per block.
    nb_per_part = pl.cdiv(rows_needed, num_parts * MAX_BLOCK_ROWS)
    block_rows = _round_up(pl.cdiv(rows_needed, num_parts * nb_per_part), ACC_ROWS)
    rows = num_parts * nb_per_part * block_rows

    pad = rows * LANES - n
    if pad:
        # Padded elements (logit=+100, sign=+1): q clamps/rounds to 1.0f, so
        # focus == 0 and log(q) == 0 -> exactly zero contribution; no tail mask.
        x = jnp.pad(x, (0, pad), constant_values=100.0)
        s = jnp.pad(s, (0, pad), constant_values=1)
    x = x.reshape(rows, LANES)
    s = s.reshape(rows, LANES)

    grid = (num_parts, nb_per_part)
    kernel = functools.partial(_focal_loss_kernel, gamma=float(gamma), w0=w0, w1=w1)
    in_map = lambda c, i: (c * nb_per_part + i, 0)

    out = pl.pallas_call(
        kernel,
        out_shape=jax.ShapeDtypeStruct((num_parts * ACC_ROWS, LANES), jnp.float32),
        grid_spec=pltpu.PrefetchScalarGridSpec(
            num_scalar_prefetch=0,
            grid=grid,
            in_specs=[
                pl.BlockSpec((block_rows, LANES), in_map),
                pl.BlockSpec((block_rows, LANES), in_map),
            ],
            out_specs=pl.BlockSpec((ACC_ROWS, LANES), lambda c, i: (c, 0)),
        ),
        compiler_params=pltpu.CompilerParams(
            dimension_semantics=("parallel", "arbitrary"),
            vmem_limit_bytes=48 * 1024 * 1024),
    )(x, s)

    return jnp.sum(out) / n      # size_average=True
    # TODO(synk): size_average=False (per-element batch_loss) is not exposed.
    # TODO(synk): the type='softmax' branch of the PyTorch module is not implemented.


def _reference(logit, target, class_weight=None, gamma=2.0):
    if class_weight is None:
        class_weight = [1.0, 1.0]
    p = jax.nn.sigmoid(jnp.ravel(logit).astype(jnp.float32))
    is_pos = jnp.ravel(target) > 0
    q = jnp.where(is_pos, p, 1.0 - p)
    q = jnp.clip(q, 1e-8, 1.0 - 1e-8)
    focus = jnp.clip((1.0 - q) ** gamma, 0.0, 2.0)
    w = jnp.where(is_pos, class_weight[1], class_weight[0]).astype(jnp.float32)
    return jnp.mean(-w * focus * jnp.log(q))


if __name__ == "__main__":
    key = jax.random.PRNGKey(0)

    def check(shape, class_weight=None, gamma=2.0, seed_offset=0):
        k1, k2 = jax.random.split(jax.random.fold_in(key, seed_offset))
        logit = jax.random.normal(k1, shape, dtype=jnp.float32)
        target = jax.random.bernoulli(k2, p=0.3, shape=shape).astype(jnp.int32)
        got = jax.block_until_ready(
            robust_focal_loss_2d(logit, target, class_weight=class_weight, gamma=gamma))
        want = jax.block_until_ready(_reference(logit, target, class_weight, gamma))
        np.testing.assert_allclose(np.asarray(got), np.asarray(want),
                                   rtol=2e-5, atol=1e-6)

    # Default sigmoid / gamma=2 path (NCHW binary-segmentation-style logits).
    check((2, 4, 16, 16), seed_offset=0)
    # Ragged tail + per-class weights + general-gamma path.
    check((3, 1, 7, 11), class_weight=[0.3, 0.7], gamma=3.0, seed_offset=1)
    # Multi-block grid: both parts, >1 row-block per part (resident accumulator).
    check((2, 8, 512, 256), seed_offset=2)

    print("KERNEL_OK")
</pallas_src>

<mosaic_0001>
module attributes {stable_mosaic.version = 11 : i64} {
  func.func @_focal_loss_kernel(%arg0: i32, %arg1: i32, %arg2: memref<64x128xf32, #tpu.memory_space<vmem>>, %arg3: memref<64x128xi8, #tpu.memory_space<vmem>>, %arg4: memref<64x128xf32, #tpu.memory_space<vmem>>) attributes {dimension_semantics = [#tpu.dimension_semantics<parallel>, #tpu.dimension_semantics<arbitrary>], iteration_bounds = array<i64: 1, 1>, scalar_prefetch = 0 : i64, scratch_operands = 0 : i64, tpu.core_type = #tpu.core_type<tc>, window_params = [{transform_indices = @transform_0, window_bounds = array<i64: 64, 128>}, {transform_indices = @transform_1, window_bounds = array<i64: 64, 128>}, {transform_indices = @transform_2, window_bounds = array<i64: 64, 128>}]} {
    %c0_i32 = arith.constant 0 : i32
    %0 = arith.cmpi eq, %arg1, %c0_i32 : i32
    %1 = arith.extui %0 : i1 to i32
    %c0_i32_0 = arith.constant 0 : i32
    %2 = arith.cmpi ne, %1, %c0_i32_0 : i32
    scf.if %2 {
      %cst_12 = arith.constant 0.000000e+00 : f32
      %26 = vector.broadcast %cst_12 : f32 to vector<64x128xf32>
      %c0_13 = arith.constant 0 : index
      %c0_14 = arith.constant 0 : index
      %27 = vector.load %arg4[%c0_13, %c0_14] : memref<64x128xf32, #tpu.memory_space<vmem>>, vector<64x128xf32>
      tpu.vector_store %arg4[%c0_13, %c0_14], %26 {strides = array<i32>} : memref<64x128xf32, #tpu.memory_space<vmem>>, vector<64x128xf32>,
    } else {
    }
    %c0 = arith.constant 0 : index
    %c0_1 = arith.constant 0 : index
    %3 = vector.load %arg2[%c0, %c0_1] : memref<64x128xf32, #tpu.memory_space<vmem>>, vector<64x128xf32>
    %c0_2 = arith.constant 0 : index
    %c0_3 = arith.constant 0 : index
    %4 = vector.load %arg3[%c0_2, %c0_3] : memref<64x128xi8, #tpu.memory_space<vmem>>, vector<64x128xi8>
    %5 = arith.sitofp %4 : vector<64x128xi8> to vector<64x128xf32>
    %6 = arith.mulf %3, %5 : vector<64x128xf32>
    %7 = arith.negf %6 : vector<64x128xf32>
    %8 = math.exp %7 : vector<64x128xf32>
    %cst = arith.constant 1.000000e+00 : f32
    %9 = vector.broadcast %cst : f32 to vector<64x128xf32>
    %10 = arith.addf %9, %8 : vector<64x128xf32>
    %11 = arith.divf %9, %10 : vector<64x128xf32>
    %cst_4 = arith.constant 9.99999993E-9 : f32
    %cst_5 = arith.constant 1.000000e+00 : f32
    %12 = vector.broadcast %cst_4 : f32 to vector<64x128xf32>
    %13 = arith.maximumf %12, %11 : vector<64x128xf32>
    %14 = vector.broadcast %cst_5 : f32 to vector<64x128xf32>
    %15 = arith.minimumf %14, %13 : vector<64x128xf32>
    %cst_6 = arith.constant 1.000000e+00 : f32
    %16 = vector.broadcast %cst_6 : f32 to vector<64x128xf32>
    %17 = arith.subf %16, %15 : vector<64x128xf32>
    %18 = arith.mulf %17, %17 : vector<64x128xf32>
    %19 = math.log %15 : vector<64x128xf32>
    %20 = arith.mulf %18, %19 : vector<64x128xf32>
    %c0_7 = arith.constant 0 : index
    %c0_8 = arith.constant 0 : index
    %21 = vector.load %arg4[%c0_7, %c0_8] : memref<64x128xf32, #tpu.memory_space<vmem>>, vector<64x128xf32>
    %22 = vector.shape_cast %20 : vector<64x128xf32> to vector<1x64x128xf32>
    %cst_9 = arith.constant dense<0.000000e+00> : vector<64x128xf32>
    %23 = vector.multi_reduction <add>, %22, %cst_9 [0] : vector<1x64x128xf32> to vector<64x128xf32>
    %24 = arith.subf %21, %23 : vector<64x128xf32>
    %c0_10 = arith.constant 0 : index
    %c0_11 = arith.constant 0 : index
    %25 = vector.load %arg4[%c0_10, %c0_11] : memref<64x128xf32, #tpu.memory_space<vmem>>, vector<64x128xf32>
    tpu.vector_store %arg4[%c0_10, %c0_11], %24 {strides = array<i32>} : memref<64x128xf32, #tpu.memory_space<vmem>>, vector<64x128xf32>,
    return
  }
  func.func @transform_0(%arg0: i32, %arg1: i32) -> (i32, i32) {
    %c1_i32 = arith.constant 1 : i32
    %0 = arith.muli %arg0, %c1_i32 : i32
    %1 = arith.addi %0, %arg1 : i32
    %c0_i32 = arith.constant 0 : i32
    %c0_i32_0 = arith.constant 0 : i32
    return %1, %c0_i32 : i32, i32
  }
  func.func @transform_1(%arg0: i32, %arg1: i32) -> (i32, i32) {
    %c1_i32 = arith.constant 1 : i32
    %0 = arith.muli %arg0, %c1_i32 : i32
    %1 = arith.addi %0, %arg1 : i32
    %c0_i32 = arith.constant 0 : i32
    %c0_i32_0 = arith.constant 0 : i32
    return %1, %c0_i32 : i32, i32
  }
  func.func @transform_2(%arg0: i32, %arg1: i32) -> (i32, i32) {
    %c0_i32 = arith.constant 0 : i32
    %c0_i32_0 = arith.constant 0 : i32
    return %arg0, %c0_i32 : i32, i32
  }
}

</mosaic_0001>

<bundles_post_ra>
// kernel: tpu_custom_call.1
= control target key start
LH: loop header
LB: loop body
LE: loop exit
PB: predicated region body
PF: predicated region fallthrough
CT: control target
= control target key end

     0   :  { %7 = vsyncpa [#allocation3], 0  ;;  %s451_s0 = inlined_call_operand.hbm [shape: f32[64,128], index: 0, kind: input, shape index: {}]   ;;  %s452_s1 = inlined_call_operand.hbm [shape: s8[64,128], index: 1, kind: input, shape index: {}]   ;;  %s453_s2 = inlined_call_operand.hbm [shape: f32[64,128], index: 2, kind: output, shape index: {}]  }
   0x1   :  { %8 = vsyncpa [#allocation6], 0 }
   0x2   :  { %9 = vsyncpa [#allocation4], 0  ;;  %s386_s9 = smov [#allocation2]   ;;  %s314_s13 = scalar_lea.hbm %s451_s0, 1024 }
   0x3   :  { %s19_s10 = sshll.u32 %s386_s9, 4  ;;  %p315_p0 = scmp.ne.s32.totalorder %s451_s0, %s314_s13  ;;  %s20_s10 = int_to_ptr.vmem [resolvable:$true] %s19_s10 }
   0x4   :  { %p318_p1 = scmp.lt.u32.totalorder %s314_s13, %s451_s0 }
   0x6   :  { %p320_p2 = pnand %p318_p1, %p315_p0 }
   0x8   :  { %323 = shalt.err (!%p320_p2)
}
   0x9   :  { %s324_s18 = scalar_lea.vmem %s20_s10, 1024  ;;  %p329_p4 = scmp.lt.s32.totalorder %s20_s10, %s20_s10 }
   0xa   :  { %p325_p3 = scmp.ne.s32.totalorder %s20_s10, %s324_s18  ;;  %p330_p5 = scmp.lt.s32.totalorder %s324_s18, %s324_s18 }
   0xc   :  { %p331_p6 = por %p330_p5, %p329_p4 }
   0xe   :  { %p332_p7 = pnand %p331_p6, %p325_p3 }
  0x10   :  { %335 = shalt.err (!%p332_p7)
}
  0x11   :  { %s387_s19 = smov 128   ;;  %s388_s20 = smov 8  }
  0x12   :  { %25 = dma.hbm_to_vmem [thread:$0]  %s451_s0, 1024, %s20_s10, [#allocation3], %s387_s19, %s387_s19, %s388_s20  }
  0x13   :  { %s389_s23 = smov [#allocation5]   ;;  %s336_s27 = scalar_lea.hbm %s452_s1, 256 }
  0x14   :  { %s35_s24 = sshll.u32 %s389_s23, 4  ;;  %p337_p8 = scmp.ne.s32.totalorder %s452_s1, %s336_s27  ;;  %s36_s24 = int_to_ptr.vmem [resolvable:$true] %s35_s24 }
  0x15   :  { %p340_p9 = scmp.lt.u32.totalorder %s336_s27, %s452_s1 }
  0x17   :  { %p342_p10 = pnand %p340_p9, %p337_p8 }
  0x19   :  { %345 = shalt.err (!%p342_p10)
}
  0x1a   :  { %s346_s4 = scalar_lea.vmem %s36_s24, 256  ;;  %p351_p12 = scmp.lt.s32.totalorder %s36_s24, %s36_s24 }
  0x1b   :  { %p347_p11 = scmp.ne.s32.totalorder %s36_s24, %s346_s4  ;;  %p352_p13 = scmp.lt.s32.totalorder %s346_s4, %s346_s4 }
  0x1d   :  { %p353_p0 = por %p352_p13, %p351_p12 }
  0x1f   :  { %p354_p1 = pnand %p353_p0, %p347_p11 }
  0x21   :  { %357 = shalt.err (!%p354_p1)
}
  0x22   :  { %41 = dma.hbm_to_vmem [thread:$0]  %s452_s1, 256, %s36_s24, [#allocation6], %s387_s19, %s387_s19, %s388_s20  }
  0x23   :  { %380 = dma.done.wait [#allocation3], 1024  }
  0x24   :  { %381 = vsyncadd [#allocation3], 4294966272 }
  0x25   :  { %382 = dma.done.wait [#allocation6], 256  }
  0x26   :  { %383 = vsyncadd [#allocation6], 4294967040  ;;  %v72_v0 = vld [vmem:[#allocation5] sm:$0xff]  ;;  %v65_v3 = vld [vmem:[#allocation2 + $0x8] sm:$0xff]  ;;  %s390_s1 = smov [#allocation7]  }
  0x27   :  { %v64_v1 = vld [vmem:[#allocation2] sm:$0xff]  ;;  %v74_v2 = vunpack.c.0.s8 %v72_v0  ;;  %v75_v4 = vunpack.c.1.s8 %v72_v0  ;;  %v76_v5 = vunpack.c.2.s8 %v72_v0  ;;  %v77_v6 = vunpack.c.3.s8 %v72_v0  ;;  %v66_v7 = vld [vmem:[#allocation2 + $0x10] sm:$0xff]  ;;  %v67_v8 = vld [vmem:[#allocation2 + $0x18] sm:$0xff]  ;;  %s239_s6 = sshll.u32 %s390_s1, 4  ;;  %s240_s6 = int_to_ptr.vmem [resolvable:$true] %s239_s6 }
  0x28   :  { %v73_v9 = vld [vmem:[#allocation5 + $0x8] sm:$0xff]  ;;  %v68_v22 = vld [vmem:[#allocation2 + $0x20] sm:$0xff]  ;;  %v70_v24 = vld [vmem:[#allocation2 + $0x30] sm:$0xff]  ;;  %s358_s7 = scalar_lea.vmem %s240_s6, 1024  ;;  %p363_p3 = scmp.lt.s32.totalorder %s240_s6, %s240_s6 }
  0x29   :  { %v82_v10 = vcvt.s32.f32 %v74_v2  ;;  %v83_v11 = vcvt.s32.f32 %v75_v4  ;;  %v84_v12 = vcvt.s32.f32 %v76_v5  ;;  %v85_v13 = vcvt.s32.f32 %v77_v6  ;;  %v69_v23 = vld [vmem:[#allocation2 + $0x28] sm:$0xff]  ;;  %v71_v28 = vld [vmem:[#allocation2 + $0x38] sm:$0xff]  ;;  %p359_p2 = scmp.ne.s32.totalorder %s240_s6, %s358_s7  ;;  %p364_p4 = scmp.lt.s32.totalorder %s358_s7, %s358_s7 }
  0x2a   :  { %v78_v14 = vunpack.c.0.s8 %v73_v9  ;;  %v79_v15 = vunpack.c.1.s8 %v73_v9  ;;  %v80_v16 = vunpack.c.2.s8 %v73_v9  ;;  %v81_v17 = vunpack.c.3.s8 %v73_v9 }
  0x2b   :  { %v90_v18 = vmul.f32 %v82_v10, %v64_v1  ;;  %v91_v19 = vmul.f32 %v83_v11, %v65_v3  ;;  %v92_v20 = vmul.f32 %v84_v12, %v66_v7  ;;  %v93_v21 = vmul.f32 %v85_v13, %v67_v8  ;;  %p365_p5 = por %p364_p4, %p363_p3 }
  0x2c   :  { %v86_v25 = vcvt.s32.f32 %v78_v14  ;;  %v87_v26 = vcvt.s32.f32 %v79_v15  ;;  %v88_v27 = vcvt.s32.f32 %v80_v16  ;;  %v89_v29 = vcvt.s32.f32 %v81_v17 }
  0x2d   :  { %v252_v30 = vmul.f32 -1.442695, %v90_v18  ;;  %v253_v31 = vmul.f32 -1.442695, %v91_v19  ;;  %v254_v32 = vmul.f32 -1.442695, %v92_v20  ;;  %p366_p6 = pnand %p365_p5, %p359_p2 }
  0x2e   :  { %v255_v33 = vmul.f32 -1.442695, %v93_v21  ;;  %v94_v34 = vmul.f32 %v86_v25, %v68_v22  ;;  %v95_v35 = vmul.f32 %v87_v26, %v69_v23  ;;  %v96_v36 = vmul.f32 %v88_v27, %v70_v24 }
  0x2f   :  { %266 = vpow2.f32 %v252_v30  ;;  %v97_v37 = vmul.f32 %v89_v29, %v71_v28 }
  0x30   :  { %268 = vpow2.f32 %v253_v31  ;;  %v256_v38 = vmul.f32 -1.442695, %v94_v34  ;;  %v257_v39 = vmul.f32 -1.442695, %v95_v35  ;;  %v258_v40 = vmul.f32 -1.442695, %v96_v36 }
  0x31   :  { %270 = vpow2.f32 %v254_v32  ;;  %v259_v41 = vmul.f32 -1.442695, %v97_v37 }
  0x32   :  { %272 = vpow2.f32 %v255_v33 }
  0x33   :  { %274 = vpow2.f32 %v256_v38 }
  0x34   :  { %276 = vpow2.f32 %v257_v39 }
  0x35   :  { %278 = vpow2.f32 %v258_v40 }
  0x36   :  { %280 = vpow2.f32 %v259_v41 }
  0x39   :  { %v267_v42 = vpop.eup %266 }
  0x3a   :  { %v269_v43 = vpop.eup %268  ;;  %v122_v44 = vadd.f32 1.0, %v267_v42 }
  0x3b   :  { %v271_v45 = vpop.eup %270  ;;  %v123_v46 = vadd.f32 1.0, %v269_v43 }
  0x3c   :  { %v273_v47 = vpop.eup %272  ;;  %282 = vrcp.f32 %v122_v44  ;;  %v124_v48 = vadd.f32 1.0, %v271_v45 }
  0x3d   :  { %v275_v49 = vpop.eup %274  ;;  %284 = vrcp.f32 %v123_v46  ;;  %v125_v50 = vadd.f32 1.0, %v273_v47 }
  0x3e   :  { %v277_v51 = vpop.eup %276  ;;  %286 = vrcp.f32 %v124_v48  ;;  %v126_v52 = vadd.f32 1.0, %v275_v49 }
  0x3f   :  { %v279_v53 = vpop.eup %278  ;;  %288 = vrcp.f32 %v125_v50  ;;  %v127_v54 = vadd.f32 1.0, %v277_v51 }
  0x40   :  { %v281_v55 = vpop.eup %280  ;;  %290 = vrcp.f32 %v126_v52  ;;  %v128_v56 = vadd.f32 1.0, %v279_v53 }
  0x41   :  { %292 = vrcp.f32 %v127_v54  ;;  %v129_v57 = vadd.f32 1.0, %v281_v55 }
  0x42   :  { %294 = vrcp.f32 %v128_v56 }
  0x43   :  { %296 = vrcp.f32 %v129_v57 }
  0x46   :  { %v283_v58 = vpop.eup %282 }
  0x47   :  { %v285_v59 = vpop.eup %284  ;;  %v146_v60 = vmax.f32 %v283_v58, 1e-08 }
  0x48   :  { %v287_v61 = vpop.eup %286  ;;  %v147_v62 = vmax.f32 %v285_v59, 1e-08 }
  0x49   :  { %v289_v63 = vpop.eup %288  ;;  %v154_v0 = vmin.f32 %v146_v60, 1.0  ;;  %v148_v1 = vmax.f32 %v287_v61, 1e-08 }
  0x4a   :  { %v291_v2 = vpop.eup %290  ;;  %v155_v3 = vmin.f32 %v147_v62, 1.0  ;;  %v149_v4 = vmax.f32 %v289_v63, 1e-08 }
  0x4b   :  { %v293_v5 = vpop.eup %292  ;;  %298 = vlog2.f32 %v154_v0  ;;  %v156_v6 = vmin.f32 %v148_v1, 1.0  ;;  %v150_v7 = vmax.f32 %v291_v2, 1e-08  ;;  %v162_v15 = vsub.f32 1.0, %v154_v0 }
  0x4c   :  { %v295_v8 = vpop.eup %294  ;;  %300 = vlog2.f32 %v155_v3  ;;  %v157_v9 = vmin.f32 %v149_v4, 1.0  ;;  %v151_v10 = vmax.f32 %v293_v5, 1e-08  ;;  %v163_v17 = vsub.f32 1.0, %v155_v3 }
  0x4d   :  { %v297_v11 = vpop.eup %296  ;;  %302 = vlog2.f32 %v156_v6  ;;  %v158_v12 = vmin.f32 %v150_v7, 1.0  ;;  %v152_v14 = vmax.f32 %v295_v8, 1e-08  ;;  %v164_v19 = vsub.f32 1.0, %v156_v6 }
  0x4e   :  { %304 = vlog2.f32 %v157_v9  ;;  %v159_v13 = vmin.f32 %v151_v10, 1.0  ;;  %v153_v16 = vmax.f32 %v297_v11, 1e-08  ;;  %v165_v21 = vsub.f32 1.0, %v157_v9 }
  0x4f   :  { %306 = vlog2.f32 %v158_v12  ;;  %v160_v18 = vmin.f32 %v152_v14, 1.0  ;;  %v170_v22 = vmul.f32 %v162_v15, %v162_v15  ;;  %v166_v23 = vsub.f32 1.0, %v158_v12 }
  0x50   :  { %308 = vlog2.f32 %v159_v13  ;;  %v161_v20 = vmin.f32 %v153_v16, 1.0  ;;  %v171_v25 = vmul.f32 %v163_v17, %v163_v17  ;;  %v167_v26 = vsub.f32 1.0, %v159_v13 }
  0x51   :  { %310 = vlog2.f32 %v160_v18  ;;  %v172_v29 = vmul.f32 %v164_v19, %v164_v19  ;;  %v173_v32 = vmul.f32 %v165_v21, %v165_v21  ;;  %v174_v36 = vmul.f32 %v166_v23, %v166_v23 }
  0x52   :  { %312 = vlog2.f32 %v161_v20  ;;  %v168_v37 = vsub.f32 1.0, %v160_v18  ;;  %v175_v41 = vmul.f32 %v167_v26, %v167_v26  ;;  %v169_v42 = vsub.f32 1.0, %v161_v20 }
  0x54   :  { %v176_v52 = vmul.f32 %v168_v37, %v168_v37  ;;  %v177_v56 = vmul.f32 %v169_v42, %v169_v42 }
  0x55   :  { %v299_v24 = vpop.eup %298 }
  0x56   :  { %v301_v27 = vpop.eup %300  ;;  %v179_v28 = vmul.f32 0.6931472, %v299_v24 }
  0x57   :  { %v303_v30 = vpop.eup %302  ;;  %v181_v31 = vmul.f32 0.6931472, %v301_v27 }
  0x58   :  { %v305_v33 = vpop.eup %304  ;;  %v194_v34 = vmul.f32 %v179_v28, %v170_v22  ;;  %v183_v35 = vmul.f32 0.6931472, %v303_v30 }
  0x59   :  { %v307_v38 = vpop.eup %306  ;;  %v195_v39 = vmul.f32 %v181_v31, %v171_v25  ;;  %v185_v40 = vmul.f32 0.6931472, %v305_v33 }
  0x5a   :  { %v309_v43 = vpop.eup %308  ;;  %v218_v44 = vsub.f32 0.0, %v194_v34  ;;  %v196_v45 = vmul.f32 %v183_v35, %v172_v29  ;;  %v187_v46 = vmul.f32 0.6931472, %v307_v38 }
  0x5b   :  { %v219_v47 = vsub.f32 0.0, %v195_v39  ;;  %v197_v48 = vmul.f32 %v185_v40, %v173_v32  ;;  %v189_v49 = vmul.f32 0.6931472, %v309_v43  ;;  %v311_v53 = vpop.eup %310 }
  0x5c   :  { %226 = vst [vmem:[#allocation7] sm:$0xff] %v218_v44  ;;  %v220_v50 = vsub.f32 0.0, %v196_v45  ;;  %v198_v51 = vmul.f32 %v187_v46, %v174_v36  ;;  %v313_v57 = vpop.eup %312  ;;  %v191_v59 = vmul.f32 0.6931472, %v311_v53 }
  0x5d   :  { %227 = vst [vmem:[#allocation7 + $0x8] sm:$0xff] %v219_v47  ;;  %v221_v54 = vsub.f32 0.0, %v197_v48  ;;  %v199_v55 = vmul.f32 %v189_v49, %v175_v41  ;;  %v193_v61 = vmul.f32 0.6931472, %v313_v57 }
  0x5e   :  { %228 = vst [vmem:[#allocation7 + $0x10] sm:$0xff] %v220_v50  ;;  %v222_v58 = vsub.f32 0.0, %v198_v51  ;;  %v200_v62 = vmul.f32 %v191_v59, %v176_v52 }
  0x5f   :  { %229 = vst [vmem:[#allocation7 + $0x18] sm:$0xff] %v221_v54  ;;  %v223_v60 = vsub.f32 0.0, %v199_v55  ;;  %v201_v63 = vmul.f32 %v193_v61, %v177_v56 }
  0x60   :  { %230 = vst [vmem:[#allocation7 + $0x20] sm:$0xff] %v222_v58  ;;  %v224_v0 = vsub.f32 0.0, %v200_v62 }
  0x61   :  { %231 = vst [vmem:[#allocation7 + $0x28] sm:$0xff] %v223_v60  ;;  %v225_v1 = vsub.f32 0.0, %v201_v63 }
  0x62   :  { %232 = vst [vmem:[#allocation7 + $0x30] sm:$0xff] %v224_v0 }
  0x63   :  { %233 = vst [vmem:[#allocation7 + $0x38] sm:$0xff] %v225_v1 }
  0x64   :  { %369 = shalt.err (!%p366_p6)
}
  0x65   :  { %s370_s10 = scalar_lea.hbm %s453_s2, 1024 }
  0x66   :  { %p371_p7 = scmp.ne.s32.totalorder %s453_s2, %s370_s10  ;;  %p374_p8 = scmp.lt.u32.totalorder %s370_s10, %s453_s2 }
  0x68   :  { %p376_p9 = pnand %p374_p8, %p371_p7 }
  0x6a   :  { %379 = shalt.err (!%p376_p9)
}
  0x6b   :  { %245 = dma.vmem_to_hbm [thread:$0]  %s240_s6, 1024, %s453_s2, [#allocation4], %s387_s19, %s387_s19, %s388_s20  }
  0x6c   :  { %384 = dma.done.wait [#allocation4], 1024  }
  0x6d   :  { %385 = vsyncadd [#allocation4], 4294966272 }
  0x6e   :  { %249 = vsyncpa [#allocation3], 1 }
  0x6f   :  { %250 = vsyncpa [#allocation6], 1 }
  0x70   :  { %251 = vsyncpa [#allocation4], 1 }

</bundles_post_ra>
